<compile_context>
chip_gen: v6e
topology: v6e:2x2x1
jax: 0.10.0
libtpu: 0.0.40
codegen_flags: <defaults>
</compile_context>

<pallas_src>
import functools

import jax
import jax.numpy as jnp
from jax import lax
from jax.experimental import pallas as pl
from jax.experimental.pallas import tpu as pltpu

_EPS = 1e-5


def _bn_finalize(sum_row, sumsq_row, gamma, beta, inv_n):
    """Fold training-mode BN into a single per-feature (scale, shift)."""
    mean = sum_row * inv_n
    var = sumsq_row * inv_n - mean * mean          # biased variance, one-sweep form
    scale = gamma * lax.rsqrt(var + _EPS)          # rsqrt -> EUP (free slot)
    shift = beta - mean * scale
    return scale, shift


def pong_kernel(x_ref, w1_ref, w2_ref, slab_ref, o_ref,
                stats1, stats2, ss1, ss2, *, inv_n):
    # Grid: (pass, batch_tile). pass 0 = BN1 stats, 1 = BN2 stats, 2 = emit output.
    p = pl.program_id(0)
    t = pl.program_id(1)

    @pl.when(jnp.logical_and(p == 0, t == 0))
    def _():
        stats1[...] = jnp.zeros_like(stats1)
        stats2[...] = jnp.zeros_like(stats2)
        # Zero the scale/shift scratch so the throw-away math on earlier passes
        # stays finite (its results are never used before the real finalize).
        ss1[...] = jnp.zeros_like(ss1)
        ss2[...] = jnp.zeros_like(ss2)

    # ---- Layer 1: Linear(F, 128). b1 dropped: a constant per-feature bias right
    # before a training-mode BN is exactly cancelled by the mean subtraction.
    x = x_ref[...]
    h1 = jnp.dot(x.astype(jnp.bfloat16), w1_ref[...].astype(jnp.bfloat16),
                 preferred_element_type=jnp.float32)                       # (TB, 128) f32

    @pl.when(p == 0)                      # accumulate sum & sumsq in one sweep
    def _():
        stats1[0:1, :] += jnp.sum(h1, axis=0, keepdims=True)
        stats1[1:2, :] += jnp.sum(h1 * h1, axis=0, keepdims=True)

    @pl.when(jnp.logical_and(p == 1, t == 0))   # finalize BN1 once
    def _():
        scale, shift = _bn_finalize(stats1[0:1, :], stats1[1:2, :],
                                    slab_ref[0:1, :], slab_ref[1:2, :], inv_n)
        ss1[0:1, :] = scale
        ss1[1:2, :] = shift

    a1 = jnp.maximum(h1 * ss1[0:1, :] + ss1[1:2, :], 0.0)                  # BN1 + ReLU

    # ---- Layer 2: Linear(128, 64). b2 dropped (same cancellation).
    h2 = jnp.dot(a1.astype(jnp.bfloat16), w2_ref[...].astype(jnp.bfloat16),
                 preferred_element_type=jnp.float32)                       # (TB, 64) f32

    @pl.when(p == 1)
    def _():
        stats2[0:1, :] += jnp.sum(h2, axis=0, keepdims=True)
        stats2[1:2, :] += jnp.sum(h2 * h2, axis=0, keepdims=True)

    @pl.when(jnp.logical_and(p == 2, t == 0))   # finalize BN2 once
    def _():
        scale, shift = _bn_finalize(stats2[0:1, :], stats2[1:2, :],
                                    slab_ref[2:3, 0:64], slab_ref[3:4, 0:64], inv_n)
        ss2[0:1, :] = scale
        ss2[1:2, :] = shift

    a2 = jnp.maximum(h2 * ss2[0:1, :] + ss2[1:2, :], 0.0)                  # BN2 + ReLU

    # ---- Layer 3: Linear(64, 1) on the MXU as (1,64)·(TB,64)^T -> lane-dense (1, TB).
    w3_row = slab_ref[4:5, 0:64].astype(jnp.bfloat16)
    h3 = lax.dot_general(w3_row, a2.astype(jnp.bfloat16),
                         (((1,), (1,)), ((), ())),
                         preferred_element_type=jnp.float32)               # (1, TB)
    # Writes on passes 0/1 are throw-away (finite zeros+b3); pass 2 writes last & wins.
    o_ref[...] = (h3 + slab_ref[5:6, 0:1]).astype(o_ref.dtype)


def pong_forward(x, params, *, tb=1024):
    """x: (B, F) float32. params: dict with w1 (F,128), w2 (128,64), slab (8,128)."""
    B, F = x.shape
    TB = B if B <= tb else tb
    assert B % TB == 0, "TODO(synk): pad / ragged last batch tile"
    T = B // TB
    kernel = functools.partial(pong_kernel, inv_n=float(1.0 / B))

    out = pl.pallas_call(
        kernel,
        out_shape=jax.ShapeDtypeStruct((1, B), jnp.float32),
        grid=(3, T),
        in_specs=[
            pl.BlockSpec((TB, F), lambda p, t: (t, 0)),     # x batch tile
            pl.BlockSpec((F, 128), lambda p, t: (0, 0)),    # w1 (resident)
            pl.BlockSpec((128, 64), lambda p, t: (0, 0)),   # w2 (resident)
            pl.BlockSpec((8, 128), lambda p, t: (0, 0)),    # packed small-param slab
        ],
        out_specs=pl.BlockSpec((1, TB), lambda p, t: (0, t)),
        scratch_shapes=[
            pltpu.VMEM((2, 128), jnp.float32),  # stats1: [sum; sumsq]
            pltpu.VMEM((2, 64), jnp.float32),   # stats2
            pltpu.VMEM((2, 128), jnp.float32),  # ss1: [scale; shift]
            pltpu.VMEM((2, 64), jnp.float32),   # ss2
        ],
        compiler_params=pltpu.CompilerParams(
            dimension_semantics=("arbitrary", "arbitrary")),
    )(x, params["w1"], params["w2"], params["slab"])
    return out.reshape(B, 1)


def init_params(key, input_size):
    """PyTorch-default init: Linear weight/bias ~ U(-1/sqrt(fan_in), 1/sqrt(fan_in)).
    Weights stored as (in, out). BN gamma=1, beta=0. Small params packed into one
    (8,128) slab: rows 0/1 = bn1 gamma/beta, rows 2/3 = bn2 gamma/beta (64 lanes),
    row 4 = w3 row (64 lanes), row 5 lane 0 = b3."""
    ks = jax.random.split(key, 6)

    def linear(kw, kb, fan_in, fan_out):
        bound = 1.0 / jnp.sqrt(fan_in)
        w = jax.random.uniform(kw, (fan_in, fan_out), jnp.float32, -bound, bound)
        b = jax.random.uniform(kb, (1, fan_out), jnp.float32, -bound, bound)
        return w, b

    w1, b1 = linear(ks[0], ks[1], input_size, 128)
    w2, b2 = linear(ks[2], ks[3], 128, 64)
    w3, b3 = linear(ks[4], ks[5], 64, 1)          # w3: (64, 1), b3: (1, 1)

    g1, be1 = jnp.ones((1, 128), jnp.float32), jnp.zeros((1, 128), jnp.float32)
    g2, be2 = jnp.ones((1, 64), jnp.float32), jnp.zeros((1, 64), jnp.float32)

    slab = jnp.zeros((8, 128), jnp.float32)
    slab = slab.at[0, :].set(g1[0])
    slab = slab.at[1, :].set(be1[0])
    slab = slab.at[2, :64].set(g2[0])
    slab = slab.at[3, :64].set(be2[0])
    slab = slab.at[4, :64].set(w3[:, 0])
    slab = slab.at[5, 0].set(b3[0, 0])

    return {
        "w1": w1, "w2": w2, "slab": slab,
        # Kept only for the pure-JAX reference checks:
        "b1": b1, "b2": b2, "w3": w3, "b3": b3,
        "g1": g1, "be1": be1, "g2": g2, "be2": be2,
    }


# ---------------- references ----------------

def ref_pytorch_f32(x, p):
    """Original PyTorch semantics: f32 everywhere, biases, unfused training-mode BN."""
    def bn_relu(h, g, b):
        m = h.mean(0, keepdims=True)
        v = ((h - m) ** 2).mean(0, keepdims=True)     # biased variance
        return jnp.maximum((h - m) * lax.rsqrt(v + _EPS) * g + b, 0.0)

    h = x @ p["w1"] + p["b1"]
    h = bn_relu(h, p["g1"], p["be1"])
    h = h @ p["w2"] + p["b2"]
    h = bn_relu(h, p["g2"], p["be2"])
    return h @ p["w3"] + p["b3"]


def ref_matched(x, p):
    """Mirror of the kernel algebra (bf16 MXU operands, one-sweep var, folded BN)."""
    def dot_bf16(a, b):
        return jnp.dot(a.astype(jnp.bfloat16), b.astype(jnp.bfloat16),
                       preferred_element_type=jnp.float32)

    def bn_relu(h, g, b):
        n = h.shape[0]
        s = jnp.sum(h, axis=0, keepdims=True)
        sq = jnp.sum(h * h, axis=0, keepdims=True)
        mean = s / n
        var = sq / n - mean * mean
        scale = g * lax.rsqrt(var + _EPS)
        shift = b - mean * scale
        return jnp.maximum(h * scale + shift, 0.0)

    h = dot_bf16(x, p["w1"])
    h = bn_relu(h, p["g1"], p["be1"])
    h = dot_bf16(h, p["w2"])
    h = bn_relu(h, p["g2"], p["be2"])
    return dot_bf16(h, p["w3"]) + p["b3"]


if __name__ == "__main__":
    key = jax.random.PRNGKey(0)
    k_x, k_p = jax.random.split(key)

    B, INPUT_SIZE = 8, 32
    x = jax.random.normal(k_x, (B, INPUT_SIZE), jnp.float32)
    params = init_params(k_p, INPUT_SIZE)

    out = pong_forward(x, params)
    jax.block_until_ready(out)
    assert out.shape == (B, 1) and out.dtype == jnp.float32

    # (1) Strict check against a reference that mirrors the kernel's algebra.
    r1 = ref_matched(x, params)
    assert jnp.allclose(out, r1, atol=1e-3, rtol=1e-3), "kernel != matched reference"

    # (2) Fidelity check against the original PyTorch-semantics f32 reference
    #     (biases included, unfused BN). Tolerance loosened for bf16 MXU operands.
    r2 = ref_pytorch_f32(x, params)
    assert jnp.allclose(out, r2, atol=5e-2, rtol=5e-2), "kernel != f32 PyTorch reference"

    print("KERNEL_OK")
</pallas_src>

<mosaic_0001>
module attributes {stable_mosaic.version = 11 : i64} {
  func.func @pong_kernel(%arg0: i32, %arg1: i32, %arg2: memref<8x32xf32, #tpu.memory_space<vmem>>, %arg3: memref<32x128xf32, #tpu.memory_space<vmem>>, %arg4: memref<128x64xf32, #tpu.memory_space<vmem>>, %arg5: memref<8x128xf32, #tpu.memory_space<vmem>>, %arg6: memref<1x8xf32, #tpu.memory_space<vmem>>, %arg7: memref<2x128xf32, #tpu.memory_space<vmem>>, %arg8: memref<2x64xf32, #tpu.memory_space<vmem>>, %arg9: memref<2x128xf32, #tpu.memory_space<vmem>>, %arg10: memref<2x64xf32, #tpu.memory_space<vmem>>) attributes {dimension_semantics = [#tpu.dimension_semantics<arbitrary>, #tpu.dimension_semantics<arbitrary>], iteration_bounds = array<i64: 3, 1>, scalar_prefetch = 0 : i64, scratch_operands = 4 : i64, tpu.core_type = #tpu.core_type<tc>, window_params = [{transform_indices = @transform_0, window_bounds = array<i64: 8, 32>}, {pipeline_mode = #tpu.pipeline_mode<synchronous>, transform_indices = @transform_1, window_bounds = array<i64: 32, 128>}, {pipeline_mode = #tpu.pipeline_mode<synchronous>, transform_indices = @transform_2, window_bounds = array<i64: 128, 64>}, {pipeline_mode = #tpu.pipeline_mode<synchronous>, transform_indices = @transform_3, window_bounds = array<i64: 8, 128>}, {transform_indices = @transform_4, window_bounds = array<i64: 1, 8>}]} {
    %c0_i32 = arith.constant 0 : i32
    %0 = arith.cmpi eq, %arg0, %c0_i32 : i32
    %c0_i32_0 = arith.constant 0 : i32
    %1 = arith.cmpi eq, %arg1, %c0_i32_0 : i32
    %2 = arith.andi %0, %1 : i1
    %3 = arith.extui %2 : i1 to i32
    %c0_i32_1 = arith.constant 0 : i32
    %4 = arith.cmpi ne, %3, %c0_i32_1 : i32
    scf.if %4 {
      %cst_30 = arith.constant 0.000000e+00 : f32
      %54 = vector.broadcast %cst_30 : f32 to vector<2x128xf32>
      %c0_31 = arith.constant 0 : index
      %c0_32 = arith.constant 0 : index
      %55 = vector.load %arg7[%c0_31, %c0_32] : memref<2x128xf32, #tpu.memory_space<vmem>>, vector<2x128xf32>
      tpu.vector_store %arg7[%c0_31, %c0_32], %54 {strides = array<i32>} : memref<2x128xf32, #tpu.memory_space<vmem>>, vector<2x128xf32>,
      %cst_33 = arith.constant 0.000000e+00 : f32
      %56 = vector.broadcast %cst_33 : f32 to vector<2x64xf32>
      %c0_34 = arith.constant 0 : index
      %c0_35 = arith.constant 0 : index
      %57 = vector.load %arg8[%c0_34, %c0_35] : memref<2x64xf32, #tpu.memory_space<vmem>>, vector<2x64xf32>
      tpu.vector_store %arg8[%c0_34, %c0_35], %56 {strides = array<i32>} : memref<2x64xf32, #tpu.memory_space<vmem>>, vector<2x64xf32>,
      %cst_36 = arith.constant 0.000000e+00 : f32
      %58 = vector.broadcast %cst_36 : f32 to vector<2x128xf32>
      %c0_37 = arith.constant 0 : index
      %c0_38 = arith.constant 0 : index
      %59 = vector.load %arg9[%c0_37, %c0_38] : memref<2x128xf32, #tpu.memory_space<vmem>>, vector<2x128xf32>
      tpu.vector_store %arg9[%c0_37, %c0_38], %58 {strides = array<i32>} : memref<2x128xf32, #tpu.memory_space<vmem>>, vector<2x128xf32>,
      %cst_39 = arith.constant 0.000000e+00 : f32
      %60 = vector.broadcast %cst_39 : f32 to vector<2x64xf32>
      %c0_40 = arith.constant 0 : index
      %c0_41 = arith.constant 0 : index
      %61 = vector.load %arg10[%c0_40, %c0_41] : memref<2x64xf32, #tpu.memory_space<vmem>>, vector<2x64xf32>
      tpu.vector_store %arg10[%c0_40, %c0_41], %60 {strides = array<i32>} : memref<2x64xf32, #tpu.memory_space<vmem>>, vector<2x64xf32>,
    } else {
    }
    %c0 = arith.constant 0 : index
    %c0_2 = arith.constant 0 : index
    %5 = vector.load %arg2[%c0, %c0_2] : memref<8x32xf32, #tpu.memory_space<vmem>>, vector<8x32xf32>
    %6 = arith.truncf %5 : vector<8x32xf32> to vector<8x32xbf16>
    %c0_3 = arith.constant 0 : index
    %c0_4 = arith.constant 0 : index
    %7 = vector.load %arg3[%c0_3, %c0_4] : memref<32x128xf32, #tpu.memory_space<vmem>>, vector<32x128xf32>
    %8 = arith.truncf %7 : vector<32x128xf32> to vector<32x128xbf16>
    %cst = arith.constant dense<0.000000e+00> : vector<8x128xf32>
    %9 = tpu.matmul %6, %8, %cst {dimension_numbers = #tpu.dot_dimension_numbers<[1], [0], [0], [1], [0, 0, 1, 1], [], []>} : vector<8x32xbf16>, vector<32x128xbf16>, vector<8x128xf32> -> vector<8x128xf32>
    %c0_i32_5 = arith.constant 0 : i32
    %10 = arith.cmpi eq, %arg0, %c0_i32_5 : i32
    %11 = arith.extui %10 : i1 to i32
    %c0_i32_6 = arith.constant 0 : i32
    %12 = arith.cmpi ne, %11, %c0_i32_6 : i32
    scf.if %12 {
      %c0_30 = arith.constant 0 : index
      %c0_31 = arith.constant 0 : index
      %54 = vector.load %arg7[%c0_30, %c0_31] : memref<2x128xf32, #tpu.memory_space<vmem>>, vector<1x128xf32>
      %cst_32 = arith.constant dense<0.000000e+00> : vector<128xf32>
      %55 = vector.multi_reduction <add>, %9, %cst_32 [0] : vector<8x128xf32> to vector<128xf32>
      %56 = vector.shape_cast %55 : vector<128xf32> to vector<1x128xf32>
      %57 = arith.addf %54, %56 : vector<1x128xf32>
      %c0_33 = arith.constant 0 : index
      %c0_34 = arith.constant 0 : index
      %58 = vector.load %arg7[%c0_33, %c0_34] : memref<2x128xf32, #tpu.memory_space<vmem>>, vector<1x128xf32>
      tpu.vector_store %arg7[%c0_33, %c0_34], %57 {strides = array<i32>} : memref<2x128xf32, #tpu.memory_space<vmem>>, vector<1x128xf32>,
      %c1_35 = arith.constant 1 : index
      %c0_36 = arith.constant 0 : index
      %59 = vector.load %arg7[%c1_35, %c0_36] : memref<2x128xf32, #tpu.memory_space<vmem>>, vector<1x128xf32>
      %60 = arith.mulf %9, %9 : vector<8x128xf32>
      %cst_37 = arith.constant dense<0.000000e+00> : vector<128xf32>
      %61 = vector.multi_reduction <add>, %60, %cst_37 [0] : vector<8x128xf32> to vector<128xf32>
      %62 = vector.shape_cast %61 : vector<128xf32> to vector<1x128xf32>
      %63 = arith.addf %59, %62 : vector<1x128xf32>
      %c1_38 = arith.constant 1 : index
      %c0_39 = arith.constant 0 : index
      %64 = vector.load %arg7[%c1_38, %c0_39] : memref<2x128xf32, #tpu.memory_space<vmem>>, vector<1x128xf32>
      tpu.vector_store %arg7[%c1_38, %c0_39], %63 {strides = array<i32>} : memref<2x128xf32, #tpu.memory_space<vmem>>, vector<1x128xf32>,
    } else {
    }
    %c1_i32 = arith.constant 1 : i32
    %13 = arith.cmpi eq, %arg0, %c1_i32 : i32
    %c0_i32_7 = arith.constant 0 : i32
    %14 = arith.cmpi eq, %arg1, %c0_i32_7 : i32
    %15 = arith.andi %13, %14 : i1
    %16 = arith.extui %15 : i1 to i32
    %c0_i32_8 = arith.constant 0 : i32
    %17 = arith.cmpi ne, %16, %c0_i32_8 : i32
    scf.if %17 {
      %c0_30 = arith.constant 0 : index
      %c0_31 = arith.constant 0 : index
      %54 = vector.load %arg7[%c0_30, %c0_31] : memref<2x128xf32, #tpu.memory_space<vmem>>, vector<1x128xf32>
      %c1_32 = arith.constant 1 : index
      %c0_33 = arith.constant 0 : index
      %55 = vector.load %arg7[%c1_32, %c0_33] : memref<2x128xf32, #tpu.memory_space<vmem>>, vector<1x128xf32>
      %c0_34 = arith.constant 0 : index
      %c0_35 = arith.constant 0 : index
      %56 = vector.load %arg5[%c0_34, %c0_35] : memref<8x128xf32, #tpu.memory_space<vmem>>, vector<1x128xf32>
      %c1_36 = arith.constant 1 : index
      %c0_37 = arith.constant 0 : index
      %57 = vector.load %arg5[%c1_36, %c0_37] : memref<8x128xf32, #tpu.memory_space<vmem>>, vector<1x128xf32>
      %cst_38 = arith.constant 1.250000e-01 : f32
      %58 = vector.broadcast %cst_38 : f32 to vector<1x128xf32>
      %59 = arith.mulf %54, %58 : vector<1x128xf32>
      %cst_39 = arith.constant 1.250000e-01 : f32
      %60 = vector.broadcast %cst_39 : f32 to vector<1x128xf32>
      %61 = arith.mulf %55, %60 : vector<1x128xf32>
      %62 = arith.mulf %59, %59 : vector<1x128xf32>
      %63 = arith.subf %61, %62 : vector<1x128xf32>
      %cst_40 = arith.constant 9.99999974E-6 : f32
      %64 = vector.broadcast %cst_40 : f32 to vector<1x128xf32>
      %65 = arith.addf %63, %64 : vector<1x128xf32>
      %66 = math.rsqrt %65 : vector<1x128xf32>
      %67 = arith.mulf %56, %66 : vector<1x128xf32>
      %68 = arith.mulf %59, %67 : vector<1x128xf32>
      %69 = arith.subf %57, %68 : vector<1x128xf32>
      %c0_41 = arith.constant 0 : index
      %c0_42 = arith.constant 0 : index
      %70 = vector.load %arg9[%c0_41, %c0_42] : memref<2x128xf32, #tpu.memory_space<vmem>>, vector<1x128xf32>
      tpu.vector_store %arg9[%c0_41, %c0_42], %67 {strides = array<i32>} : memref<2x128xf32, #tpu.memory_space<vmem>>, vector<1x128xf32>,
      %c1_43 = arith.constant 1 : index
      %c0_44 = arith.constant 0 : index
      %71 = vector.load %arg9[%c1_43, %c0_44] : memref<2x128xf32, #tpu.memory_space<vmem>>, vector<1x128xf32>
      tpu.vector_store %arg9[%c1_43, %c0_44], %69 {strides = array<i32>} : memref<2x128xf32, #tpu.memory_space<vmem>>, vector<1x128xf32>,
    } else {
    }
    %c0_9 = arith.constant 0 : index
    %c0_10 = arith.constant 0 : index
    %18 = vector.load %arg9[%c0_9, %c0_10] : memref<2x128xf32, #tpu.memory_space<vmem>>, vector<1x128xf32>
    %19 = vector.broadcast %18 : vector<1x128xf32> to vector<8x128xf32>
    %20 = arith.mulf %9, %19 : vector<8x128xf32>
    %c1 = arith.constant 1 : index
    %c0_11 = arith.constant 0 : index
    %21 = vector.load %arg9[%c1, %c0_11] : memref<2x128xf32, #tpu.memory_space<vmem>>, vector<1x128xf32>
    %22 = vector.broadcast %21 : vector<1x128xf32> to vector<8x128xf32>
    %23 = arith.addf %20, %22 : vector<8x128xf32>
    %cst_12 = arith.constant 0.000000e+00 : f32
    %24 = vector.broadcast %cst_12 : f32 to vector<8x128xf32>
    %25 = arith.maximumf %23, %24 : vector<8x128xf32>
    %26 = arith.truncf %25 : vector<8x128xf32> to vector<8x128xbf16>
    %c0_13 = arith.constant 0 : index
    %c0_14 = arith.constant 0 : index
    %27 = vector.load %arg4[%c0_13, %c0_14] : memref<128x64xf32, #tpu.memory_space<vmem>>, vector<128x64xf32>
    %28 = arith.truncf %27 : vector<128x64xf32> to vector<128x64xbf16>
    %cst_15 = arith.constant dense<0.000000e+00> : vector<8x64xf32>
    %29 = tpu.matmul %26, %28, %cst_15 {dimension_numbers = #tpu.dot_dimension_numbers<[1], [0], [0], [1], [0, 0, 1, 1], [], []>} : vector<8x128xbf16>, vector<128x64xbf16>, vector<8x64xf32> -> vector<8x64xf32>
    %c1_i32_16 = arith.constant 1 : i32
    %30 = arith.cmpi eq, %arg0, %c1_i32_16 : i32
    %31 = arith.extui %30 : i1 to i32
    %c0_i32_17 = arith.constant 0 : i32
    %32 = arith.cmpi ne, %31, %c0_i32_17 : i32
    scf.if %32 {
      %c0_30 = arith.constant 0 : index
      %c0_31 = arith.constant 0 : index
      %54 = vector.load %arg8[%c0_30, %c0_31] : memref<2x64xf32, #tpu.memory_space<vmem>>, vector<1x64xf32>
      %cst_32 = arith.constant dense<0.000000e+00> : vector<64xf32>
      %55 = vector.multi_reduction <add>, %29, %cst_32 [0] : vector<8x64xf32> to vector<64xf32>
      %56 = vector.shape_cast %55 : vector<64xf32> to vector<1x64xf32>
      %57 = arith.addf %54, %56 : vector<1x64xf32>
      %c0_33 = arith.constant 0 : index
      %c0_34 = arith.constant 0 : index
      %58 = vector.load %arg8[%c0_33, %c0_34] : memref<2x64xf32, #tpu.memory_space<vmem>>, vector<1x64xf32>
      tpu.vector_store %arg8[%c0_33, %c0_34], %57 {strides = array<i32>} : memref<2x64xf32, #tpu.memory_space<vmem>>, vector<1x64xf32>,
      %c1_35 = arith.constant 1 : index
      %c0_36 = arith.constant 0 : index
      %59 = vector.load %arg8[%c1_35, %c0_36] : memref<2x64xf32, #tpu.memory_space<vmem>>, vector<1x64xf32>
      %60 = arith.mulf %29, %29 : vector<8x64xf32>
      %cst_37 = arith.constant dense<0.000000e+00> : vector<64xf32>
      %61 = vector.multi_reduction <add>, %60, %cst_37 [0] : vector<8x64xf32> to vector<64xf32>
      %62 = vector.shape_cast %61 : vector<64xf32> to vector<1x64xf32>
      %63 = arith.addf %59, %62 : vector<1x64xf32>
      %c1_38 = arith.constant 1 : index
      %c0_39 = arith.constant 0 : index
      %64 = vector.load %arg8[%c1_38, %c0_39] : memref<2x64xf32, #tpu.memory_space<vmem>>, vector<1x64xf32>
      tpu.vector_store %arg8[%c1_38, %c0_39], %63 {strides = array<i32>} : memref<2x64xf32, #tpu.memory_space<vmem>>, vector<1x64xf32>,
    } else {
    }
    %c2_i32 = arith.constant 2 : i32
    %33 = arith.cmpi eq, %arg0, %c2_i32 : i32
    %c0_i32_18 = arith.constant 0 : i32
    %34 = arith.cmpi eq, %arg1, %c0_i32_18 : i32
    %35 = arith.andi %33, %34 : i1
    %36 = arith.extui %35 : i1 to i32
    %c0_i32_19 = arith.constant 0 : i32
    %37 = arith.cmpi ne, %36, %c0_i32_19 : i32
    scf.if %37 {
      %c0_30 = arith.constant 0 : index
      %c0_31 = arith.constant 0 : index
      %54 = vector.load %arg8[%c0_30, %c0_31] : memref<2x64xf32, #tpu.memory_space<vmem>>, vector<1x64xf32>
      %c1_32 = arith.constant 1 : index
      %c0_33 = arith.constant 0 : index
      %55 = vector.load %arg8[%c1_32, %c0_33] : memref<2x64xf32, #tpu.memory_space<vmem>>, vector<1x64xf32>
      %c2 = arith.constant 2 : index
      %c0_34 = arith.constant 0 : index
      %56 = vector.load %arg5[%c2, %c0_34] : memref<8x128xf32, #tpu.memory_space<vmem>>, vector<1x64xf32>
      %c3 = arith.constant 3 : index
      %c0_35 = arith.constant 0 : index
      %57 = vector.load %arg5[%c3, %c0_35] : memref<8x128xf32, #tpu.memory_space<vmem>>, vector<1x64xf32>
      %cst_36 = arith.constant 1.250000e-01 : f32
      %58 = vector.broadcast %cst_36 : f32 to vector<1x64xf32>
      %59 = arith.mulf %54, %58 : vector<1x64xf32>
      %cst_37 = arith.constant 1.250000e-01 : f32
      %60 = vector.broadcast %cst_37 : f32 to vector<1x64xf32>
      %61 = arith.mulf %55, %60 : vector<1x64xf32>
      %62 = arith.mulf %59, %59 : vector<1x64xf32>
      %63 = arith.subf %61, %62 : vector<1x64xf32>
      %cst_38 = arith.constant 9.99999974E-6 : f32
      %64 = vector.broadcast %cst_38 : f32 to vector<1x64xf32>
      %65 = arith.addf %63, %64 : vector<1x64xf32>
      %66 = math.rsqrt %65 : vector<1x64xf32>
      %67 = arith.mulf %56, %66 : vector<1x64xf32>
      %68 = arith.mulf %59, %67 : vector<1x64xf32>
      %69 = arith.subf %57, %68 : vector<1x64xf32>
      %c0_39 = arith.constant 0 : index
      %c0_40 = arith.constant 0 : index
      %70 = vector.load %arg10[%c0_39, %c0_40] : memref<2x64xf32, #tpu.memory_space<vmem>>, vector<1x64xf32>
      tpu.vector_store %arg10[%c0_39, %c0_40], %67 {strides = array<i32>} : memref<2x64xf32, #tpu.memory_space<vmem>>, vector<1x64xf32>,
      %c1_41 = arith.constant 1 : index
      %c0_42 = arith.constant 0 : index
      %71 = vector.load %arg10[%c1_41, %c0_42] : memref<2x64xf32, #tpu.memory_space<vmem>>, vector<1x64xf32>
      tpu.vector_store %arg10[%c1_41, %c0_42], %69 {strides = array<i32>} : memref<2x64xf32, #tpu.memory_space<vmem>>, vector<1x64xf32>,
    } else {
    }
    %c0_20 = arith.constant 0 : index
    %c0_21 = arith.constant 0 : index
    %38 = vector.load %arg10[%c0_20, %c0_21] : memref<2x64xf32, #tpu.memory_space<vmem>>, vector<1x64xf32>
    %39 = vector.broadcast %38 : vector<1x64xf32> to vector<8x64xf32>
    %40 = arith.mulf %29, %39 : vector<8x64xf32>
    %c1_22 = arith.constant 1 : index
    %c0_23 = arith.constant 0 : index
    %41 = vector.load %arg10[%c1_22, %c0_23] : memref<2x64xf32, #tpu.memory_space<vmem>>, vector<1x64xf32>
    %42 = vector.broadcast %41 : vector<1x64xf32> to vector<8x64xf32>
    %43 = arith.addf %40, %42 : vector<8x64xf32>
    %cst_24 = arith.constant 0.000000e+00 : f32
    %44 = vector.broadcast %cst_24 : f32 to vector<8x64xf32>
    %45 = arith.maximumf %43, %44 : vector<8x64xf32>
    %c4 = arith.constant 4 : index
    %c0_25 = arith.constant 0 : index
    %46 = vector.load %arg5[%c4, %c0_25] : memref<8x128xf32, #tpu.memory_space<vmem>>, vector<1x64xf32>
    %47 = arith.truncf %46 : vector<1x64xf32> to vector<1x64xbf16>
    %48 = arith.truncf %45 : vector<8x64xf32> to vector<8x64xbf16>
    %cst_26 = arith.constant dense<0.000000e+00> : vector<1x8xf32>
    %49 = tpu.matmul %47, %48, %cst_26 {dimension_numbers = #tpu.dot_dimension_numbers<[1], [1], [0], [0], [0, 0, 1, 0], [], []>} : vector<1x64xbf16>, vector<8x64xbf16>, vector<1x8xf32> -> vector<1x8xf32>
    %c5 = arith.constant 5 : index
    %c0_27 = arith.constant 0 : index
    %50 = vector.load %arg5[%c5, %c0_27] : memref<8x128xf32, #tpu.memory_space<vmem>>, vector<1x1xf32>
    %51 = vector.broadcast %50 : vector<1x1xf32> to vector<1x8xf32>
    %52 = arith.addf %49, %51 : vector<1x8xf32>
    %c0_28 = arith.constant 0 : index
    %c0_29 = arith.constant 0 : index
    %53 = vector.load %arg6[%c0_28, %c0_29] : memref<1x8xf32, #tpu.memory_space<vmem>>, vector<1x8xf32>
    tpu.vector_store %arg6[%c0_28, %c0_29], %52 {strides = array<i32>} : memref<1x8xf32, #tpu.memory_space<vmem>>, vector<1x8xf32>,
    return
  }
  func.func @transform_0(%arg0: i32, %arg1: i32) -> (i32, i32) {
    %c0_i32 = arith.constant 0 : i32
    %c0_i32_0 = arith.constant 0 : i32
    return %arg1, %c0_i32 : i32, i32
  }
  func.func @transform_1(%arg0: i32, %arg1: i32) -> (i32, i32) {
    %c0_i32 = arith.constant 0 : i32
    %c0_i32_0 = arith.constant 0 : i32
    %c0_i32_1 = arith.constant 0 : i32
    return %c0_i32, %c0_i32_0 : i32, i32
  }
  func.func @transform_2(%arg0: i32, %arg1: i32) -> (i32, i32) {
    %c0_i32 = arith.constant 0 : i32
    %c0_i32_0 = arith.constant 0 : i32
    %c0_i32_1 = arith.constant 0 : i32
    return %c0_i32, %c0_i32_0 : i32, i32
  }
  func.func @transform_3(%arg0: i32, %arg1: i32) -> (i32, i32) {
    %c0_i32 = arith.constant 0 : i32
    %c0_i32_0 = arith.constant 0 : i32
    %c0_i32_1 = arith.constant 0 : i32
    return %c0_i32, %c0_i32_0 : i32, i32
  }
  func.func @transform_4(%arg0: i32, %arg1: i32) -> (i32, i32) {
    %c0_i32 = arith.constant 0 : i32
    %c0_i32_0 = arith.constant 0 : i32
    return %c0_i32, %arg1 : i32, i32
  }
}

</mosaic_0001>

<bundles_post_ra>
// kernel: tpu_custom_call.1
= control target key start
LH: loop header
LB: loop body
LE: loop exit
PB: predicated region body
PF: predicated region fallthrough
CT: control target
= control target key end

     0   :  { %9 = vsyncpa [#allocation7], 0  ;;  %s754_s15 = smov 0   ;;  %s756_s16 = smov 0   ;;  %s911_s0 = inlined_call_operand.vmem [shape: f32[8,32], index: 0, kind: input, shape index: {}]   ;;  %s912_s1 = inlined_call_operand.vmem [shape: f32[32,128], index: 1, kind: input, shape index: {}]   ;;  %s913_s2 = inlined_call_operand.vmem [shape: f32[128,64], index: 2, kind: input, shape index: {}]   ;;  %s914_s3 = inlined_call_operand.vmem [shape: f32[8,128], index: 3, kind: input, shape index: {}]   ;;  %s915_s4 = inlined_call_operand.hbm [shape: f32[1,8], index: 4, kind: output, shape index: {}]  }
   0x1   :  { %s758_s17 = smov 0  }
   0x2 LB: > { %s562_s18 = sadd.s32 4294967295, %s722_s17   ;;  %s27_s19 = sadd.s32 1, %s718_s16  ;;  %s722_s17 = sphi %s758_s17, %s15_s17   ;;  %s718_s16 = sphi %s756_s16, %s918_s16   ;;  %s714_s15 = sphi %s754_s15, %s917_s15  }
   0x3   : > { %p29_p0 = scmp.ge.s32.totalorder %s27_s19, 3  ;;  %p565_p1 = scmp.ge.s32.totalorder %s722_s17, 1 }
   0x4   : > { %p174_p2 = scmp.lt.s32.totalorder %s722_s17, 4 }
   0x5   : > { %s920_s19 = smov (%p29_p0, %s27_s19), 0 }
   0x6   : > { %p175_p3 = pnand %p565_p1, %p174_p2 }
   0x7   : > { %p199_p4 = scmp.eq.s32.totalorder (!%p175_p3), %s714_s15, 0 }
   0x8   : > { %178 = sbr.rel (%p175_p3) target bundleno = 786 (0x312), region = 36 }
   0xd   : > { %204 = sbr.rel (!%p199_p4) target bundleno = 18 (0x12), region = 40  ;;  %vm206_vm0 = vcmask (%p199_p4), 517120   ;;  %v724_v0 = vmov (%p199_p4), 0.0  }
   0xe   : > { %205 = vst [vmem:[#allocation2] sm:$0x3] (%p199_p4), %v724_v0  ;;  %208 = vst [vmem:[#allocation4] sm:$0x3] (%p199_p4), %v724_v0 }
   0xf   : > { %207 = vst.msk [vmem:[#allocation3] sm:$0x3] (%p199_p4), %vm206_vm0, %v724_v0  ;;  %209 = vst.msk [vmem:[#allocation5] sm:$0x3] (%p199_p4), %vm206_vm0, %v724_v0 }
  0x12 PF: > { %v214_v1 = vld [vmem:[%s912_s1 + $0x10] sm:$0xff]  ;;  %v215_v2 = vld [vmem:[%s912_s1 + $0x18] sm:$0xff]  ;;  %v212_v3 = vld [vmem:[%s912_s1] sm:$0xff]  ;;  %v725_v4 = vmov 0.0   ;;  %vm726_vm1 = vmmov 0   ;;  %vm218_vm2 = vcmask 261120  }
  0x13   : > { %598 = vmatprep.subr.bf16.mxu0 %v725_v4  ;;  %v217_v5 = vpack.c.bf16 %v215_v2, %v214_v1  ;;  %v213_v6 = vld [vmem:[%s912_s1 + $0x8] sm:$0xff]  ;;  %602 = vmatprep.mubr.msk.bf16.mxu0 %vm726_vm1, %v725_v4  ;;  %v210_v8 = vld [vmem:[%s911_s0] sm:$0xff]  ;;  %p568_p5 = scmp.ne.s32.totalorder %s714_s15, 0 }
  0x14   : > { %v216_v7 = vpack.c.bf16 %v213_v6, %v212_v3  ;;  %v211_v9 = vpack.c.bf16 %v210_v8, %v210_v8 }
  0x15   : > { %599 = vmatpush3.bf16.msra.mxu0 %v217_v5 }
  0x16   : > { %600 = vmatprep.subr.bf16.mxu0 %v725_v4 }
  0x19   : > { %601 = vmatpush3.bf16.msra.mxu0 %v216_v7 }
  0x1c   : > { %603 = vmatmul.mubr.msk.bf16.vlgmr.msra.gmra.mxu0 %vm218_vm2, %v211_v9 }
  0xdc   : > { %v795_v10 = vpop.f32.mrf.mxu0 }
  0xde   : > { %v604_v11 = vpop.f32.mrf.mxu0  ;;  %264 = sbr.rel (%p568_p5) target bundleno = 244 (0xf4), region = 44 }
  0xe0   : > { %v259_v12 = vpop.f32.mrf.mxu0 }
  0xe2   : > { %v605_v13 = vpop.f32.mrf.mxu0 }
  0xe3   : > { %v266_v14 = vrot.slane %v795_v10, 4  ;;  %v275_v15 = vmul.f32 %v795_v10, %v795_v10  ;;  %v265_v24 = vld [vmem:[#allocation2] sm:$0x1]  ;;  %v274_v27 = vld [vmem:[#allocation2 + $0x1] sm:$0x1] }
  0xe5   : > { %v267_v16 = vadd.f32 %v266_v14, %v795_v10  ;;  %v276_v17 = vrot.slane %v275_v15, 4 }
  0xe7   : > { %v268_v18 = vrot.slane %v267_v16, 2  ;;  %v277_v19 = vadd.f32 %v276_v17, %v275_v15 }
  0xe9   : > { %v269_v20 = vadd.f32 %v268_v18, %v267_v16  ;;  %v278_v21 = vrot.slane %v277_v19, 2 }
  0xeb   : > { %v270_v22 = vrot.slane %v269_v20, 1  ;;  %v279_v23 = vadd.f32 %v278_v21, %v277_v19 }
  0xed   : > { %v271_v25 = vadd.f32 %v270_v22, %v269_v20  ;;  %v280_v26 = vrot.slane %v279_v23, 1 }
  0xef   : > { %v272_v28 = vadd.f32 %v271_v25, %v265_v24  ;;  %v281_v29 = vadd.f32 %v280_v26, %v279_v23 }
  0xf1   : > { %273 = vst [vmem:[#allocation2] sm:$0x1] %v272_v28  ;;  %v282_v30 = vadd.f32 %v281_v29, %v274_v27 }
  0xf3   : > { %283 = vst [vmem:[#allocation2 + $0x1] sm:$0x1] %v282_v30 }
  0xf4 PF: > { %p284_p6 = scmp.eq.s32.totalorder %s714_s15, 1 }
  0xf5   : > { %v291_v38 = vld [vmem:[%s914_s3] sm:$0x1] (%p284_p6)  ;;  %v292_v41 = vld [vmem:[%s914_s3 + $0x1] sm:$0x1] (%p284_p6) }
  0xf6   : > { %288 = sbr.rel (!%p284_p6) target bundleno = 278 (0x116), region = 48 }
  0xf8   : > { %v289_v31 = vld [vmem:[#allocation2] sm:$0x1] (%p284_p6) }
  0xf9   : > { %v293_v33 = vmul.f32 (%p284_p6), 0.125, %v289_v31 }
  0xfa   : > { %v290_v32 = vld [vmem:[#allocation2 + $0x1] sm:$0x1] (%p284_p6) }
  0xfb   : > { %v294_v34 = vmul.f32 0.125, %v290_v32  ;;  %v295_v35 = vmul.f32 %v293_v33, %v293_v33 }
  0xfd   : > { %v296_v36 = vsub.f32 %v294_v34, %v295_v35 }
  0xff   : > { %v297_v37 = vadd.f32 1e-05, %v296_v36 }
 0x101   : > { %667 = vrsqrt.f32 %v297_v37 }
 0x10e   : > { %v668_v39 = vpop.eup %667 }
 0x10f   : > { %v299_v40 = vmul.f32 %v668_v39, %v291_v38 }
 0x111   : > { %302 = vst [vmem:[#allocation4] sm:$0x1] %v299_v40  ;;  %v300_v42 = vmul.f32 %v299_v40, %v293_v33 }
 0x113   : > { %v301_v43 = vsub.f32 %v292_v41, %v300_v42 }
 0x115   : > { %303 = vst [vmem:[#allocation4 + $0x1] sm:$0x1] %v301_v43 }
 0x116 PF: > { %606 = vmatprep.subr.bf16.mxu1 %v725_v4  ;;  %v332_v44 = vld [vmem:[%s913_s2 + $0x70] sm:$0xff]  ;;  %v333_v45 = vld [vmem:[%s913_s2 + $0x78] sm:$0xff]  ;;  %v330_v46 = vld [vmem:[%s913_s2 + $0x60] sm:$0xff]  ;;  %622 = vmatprep.mubr.msk.bf16.mxu1 %vm726_vm1, %v725_v4  ;;  %p572_p7 = scmp.ne.s32.totalorder %s714_s15, 1 }
 0x117   : > { %v341_v47 = vpack.c.bf16 %v333_v45, %v332_v44  ;;  %v331_v48 = vld [vmem:[%s913_s2 + $0x68] sm:$0xff]  ;;  %v328_v50 = vld [vmem:[%s913_s2 + $0x50] sm:$0xff]  ;;  %v329_v51 = vld [vmem:[%s913_s2 + $0x58] sm:$0xff] }
 0x118   : > { %v340_v49 = vpack.c.bf16 %v331_v48, %v330_v46  ;;  %v339_v52 = vpack.c.bf16 %v329_v51, %v328_v50  ;;  %v326_v53 = vld [vmem:[%s913_s2 + $0x40] sm:$0xff]  ;;  %v327_v54 = vld [vmem:[%s913_s2 + $0x48] sm:$0xff]  ;;  %v324_v56 = vld [vmem:[%s913_s2 + $0x30] sm:$0xff] }
 0x119   : > { %607 = vmatpush3.bf16.msra.mxu1 %v341_v47  ;;  %v338_v55 = vpack.c.bf16 %v327_v54, %v326_v53  ;;  %v325_v57 = vld [vmem:[%s913_s2 + $0x38] sm:$0xff]  ;;  %v570_v59 = vld [vmem:[#allocation4] ss:$0 sm:$0xff]  ;;  %v323_v61 = vld [vmem:[%s913_s2 + $0x28] sm:$0xff] }
 0x11a   : > { %608 = vmatprep.subr.bf16.mxu1 %v725_v4  ;;  %v337_v58 = vpack.c.bf16 %v325_v57, %v324_v56  ;;  %v322_v60 = vld [vmem:[%s913_s2 + $0x20] sm:$0xff]  ;;  %v309_v62 = vmul.f32 %v570_v59, %v795_v10  ;;  %v320_v1 = vld [vmem:[%s913_s2 + $0x10] sm:$0xff]  ;;  %v321_v2 = vld [vmem:[%s913_s2 + $0x18] sm:$0xff] }
 0x11b   : > { %v336_v63 = vpack.c.bf16 %v323_v61, %v322_v60  ;;  %v335_v5 = vpack.c.bf16 %v321_v2, %v320_v1  ;;  %v318_v6 = vld [vmem:[%s913_s2] sm:$0xff]  ;;  %v319_v7 = vld [vmem:[%s913_s2 + $0x8] sm:$0xff] }
 0x11c   : > { %v571_v0 = vld [vmem:[#allocation4 + $0x1] ss:$0 sm:$0xff]  ;;  %v334_v9 = vpack.c.bf16 %v319_v7, %v318_v6 }
 0x11d   : > { %609 = vmatpush3.bf16.msra.mxu1 %v340_v49  ;;  %v315_v3 = vadd.f32 %v571_v0, %v309_v62 }
 0x11e   : > { %610 = vmatprep.subr.bf16.mxu1 %v725_v4 }
 0x11f   : > { %v316_v8 = vmax.f32 %v315_v3, 0.0 }
 0x121   : > { %611 = vmatpush3.bf16.msra.mxu1 %v339_v52  ;;  %v317_v10 = vpack.c.bf16 %v316_v8, %v316_v8 }
 0x122   : > { %612 = vmatprep.subr.bf16.mxu1 %v725_v4 }
 0x125   : > { %613 = vmatpush3.bf16.msra.mxu1 %v338_v55 }
 0x126   : > { %614 = vmatprep.subr.bf16.mxu1 %v725_v4 }
 0x129   : > { %615 = vmatpush3.bf16.msra.mxu1 %v337_v58 }
 0x12a   : > { %616 = vmatprep.subr.bf16.mxu1 %v725_v4 }
 0x12d   : > { %617 = vmatpush3.bf16.msra.mxu1 %v336_v63 }
 0x12e   : > { %618 = vmatprep.subr.bf16.mxu1 %v725_v4 }
 0x131   : > { %619 = vmatpush3.bf16.msra.mxu1 %v335_v5 }
 0x132   : > { %620 = vmatprep.subr.bf16.mxu1 %v725_v4 }
 0x135   : > { %621 = vmatpush3.bf16.msra.mxu1 %v334_v9 }
 0x138   : > { %623 = vmatmul.mubr.bf16.vlgmr.msra.gmra.mxu1 %v317_v10 }
 0x1f8   : > { %v376_v11 = vpop.f32.mrf.mxu1 }
 0x1fa   : > { %v624_v12 = vpop.f32.mrf.mxu1  ;;  %384 = sbr.rel (%p572_p7) target bundleno = 529 (0x211), region = 52 }
 0x1fc   : > { %v379_v13 = vpop.f32.mrf.mxu1 }
 0x1fe   : > { %v625_v14 = vpop.f32.mrf.mxu1 }
 0x1ff   : > { %vm386_vm3 = vcmask 523264   ;;  %v398_v15 = vmul.f32 %v376_v11, %v376_v11  ;;  %v385_v27 = vld [vmem:[#allocation3] sm:$0x1]  ;;  %v397_v30 = vld [vmem:[#allocation3 + $0x1] sm:$0x1]  ;;  %vm395_vm4 = vcmask 516096  }
 0x200   : > { %v387_v16 = vsel %vm386_vm3, %v376_v11, 0.0 }
 0x201   : > { %v388_v17 = vrot.slane %v387_v16, 4  ;;  %v399_v18 = vsel %vm386_vm3, %v398_v15, 0.0 }
 0x202   : > { %v400_v19 = vrot.slane %v399_v18, 4 }
 0x203   : > { %v389_v20 = vadd.f32 %v388_v17, %v387_v16 }
 0x204   : > { %v401_v21 = vadd.f32 %v400_v19, %v399_v18 }
 0x205   : > { %v390_v22 = vrot.slane %v389_v20, 2 }
 0x206   : > { %v402_v23 = vrot.slane %v401_v21, 2 }
 0x207   : > { %v391_v24 = vadd.f32 %v390_v22, %v389_v20 }
 0x208   : > { %v403_v25 = vadd.f32 %v402_v23, %v401_v21 }
 0x209   : > { %v392_v26 = vrot.slane %v391_v24, 1 }
 0x20a   : > { %v404_v28 = vrot.slane %v403_v25, 1 }
 0x20b   : > { %v393_v29 = vadd.f32 %v392_v26, %v391_v24 }
 0x20c   : > { %v405_v31 = vadd.f32 %v404_v28, %v403_v25 }
 0x20d   : > { %v394_v32 = vadd.f32 %v393_v29, %v385_v27 }
 0x20e   : > { %v406_v33 = vadd.f32 %v405_v31, %v397_v30 }
 0x20f   : > { %396 = vst.msk [vmem:[#allocation3] sm:$0x1] %vm395_vm4, %v394_v32 }
 0x210   : > { %407 = vst.msk [vmem:[#allocation3 + $0x1] sm:$0x1] %vm395_vm4, %v406_v33 }
 0x211 PF: > { %p408_p8 = scmp.eq.s32.totalorder %s714_s15, 2 }
 0x212   : > { %v415_v41 = vld [vmem:[%s914_s3 + $0x2] sm:$0x1] (%p408_p8)  ;;  %vm426_vm5 = vcmask (%p408_p8), 516096   ;;  %v416_v44 = vld [vmem:[%s914_s3 + $0x3] sm:$0x1] (%p408_p8) }
 0x213   : > { %412 = sbr.rel (!%p408_p8) target bundleno = 564 (0x234), region = 56 }
 0x216   : > { %v413_v34 = vld [vmem:[#allocation3] sm:$0x1] (%p408_p8) }
 0x217   : > { %v414_v35 = vld [vmem:[#allocation3 + $0x1] sm:$0x1] (%p408_p8)  ;;  %v417_v36 = vmul.f32 (%p408_p8), 0.125, %v413_v34 }
 0x218   : > { %v418_v37 = vmul.f32 0.125, %v414_v35 }
 0x219   : > { %v419_v38 = vmul.f32 %v417_v36, %v417_v36 }
 0x21b   : > { %v420_v39 = vsub.f32 %v418_v37, %v419_v38 }
 0x21d   : > { %v421_v40 = vadd.f32 1e-05, %v420_v39 }
 0x21f   : > { %669 = vrsqrt.f32 %v421_v40 }
 0x22c   : > { %v670_v42 = vpop.eup %669 }
 0x22d   : > { %v423_v43 = vmul.f32 %v670_v42, %v415_v41 }
 0x22f   : > { %427 = vst.msk [vmem:[#allocation5] sm:$0x1] %vm426_vm5, %v423_v43  ;;  %v424_v45 = vmul.f32 %v423_v43, %v417_v36 }
 0x231   : > { %v425_v46 = vsub.f32 %v416_v44, %v424_v45 }
 0x233   : > { %428 = vst.msk [vmem:[#allocation5 + $0x1] sm:$0x1] %vm426_vm5, %v425_v46 }
 0x234 PF: > { %626 = vmatprep.subr.bf16.mxu0 %v725_v4  ;;  %628 = vmatprep.mubr.msk.bf16.mxu0 %vm726_vm1, %v725_v4  ;;  %v727_v50 = vmov 0   ;;  %v445_v51 = vld [vmem:[%s914_s3 + $0x5] sm:$0x1]  ;;  %vm451_vm6 = vcmask 523264   ;;  %v442_v56 = vld [vmem:[%s914_s3 + $0x4] sm:$0x1] }
 0x235   : > { %671 = vset.pattern.permute.xlu0 %v727_v50  ;;  %v443_v4 = vpack.c.bf16 %v442_v56, %v442_v56  ;;  %s728_s5 = smov [#allocation6]   ;;  %vm498_vm7 = vcmask 57344   ;;  %p887_p9 = scmp.eq.s32.totalorder %s562_s18, 2 }
 0x236   : > { %v574_v47 = vld [vmem:[#allocation5] ss:$0 sm:$0xff]  ;;  %448 = vperm.xlu0 %671, %v445_v51   ;;  %s509_s6 = sshll.u32 %s728_s5, 4  ;;  %s510_s6 = int_to_ptr.vmem [resolvable:$true] %s509_s6 }
 0x237   : > { %v434_v49 = vmul.f32 %v574_v47, %v376_v11  ;;  %s672_s8 = scalar_lea.vmem %s510_s6, 16  ;;  %s678_s9 = scalar_lea.vmem %s510_s6, 32 }
 0x238   : > { %p673_p10 = scmp.ne.s32.totalorder %s510_s6, %s672_s8  ;;  %p679_p13 = scmp.lt.s32.totalorder %s510_s6, %s510_s6 }
 0x239   : > { %p680_p0 = scmp.lt.s32.totalorder %s678_s9, %s672_s8 }
 0x23a   : > { %v575_v48 = vld [vmem:[#allocation5 + $0x1] ss:$0 sm:$0xff]  ;;  %p674_p11 = pnand %p673_p10, %p887_p9 }
 0x23b   : > { %v440_v52 = vadd.f32 %v575_v48, %v434_v49  ;;  %p681_p1 = por %p680_p0, %p679_p13 }
 0x23c   : > { %p675_p12 = pneg %p674_p11 }
 0x23d   : > { %v441_v53 = vmax.f32 %v440_v52, 0.0 }
 0x23e   : > { %p682_p2 = pnand %p681_p1, %p675_p12 }
 0x23f   : > { %v444_v54 = vpack.c.bf16 %v441_v53, %v441_v53 }
 0x241   : > { %v456_v55 = vsel %vm451_vm6, %v444_v54, 0 }
 0x242   : > { %627 = vmatpush3.bf16.xpose.msra.mxu0 %v456_v55 }
 0x249   : > { %629 = vmatmul.mubr.msk.bf16.vlgmr.msra.gmra.mxu0 %vm451_vm6, %v443_v4 }
 0x2b1   : > { %v449_v57 = vpop.permute.xlu0 %448 }
 0x309   : > { %v492_v58 = vpop.f32.mrf.mxu0 }
 0x30a   : > { %v493_v59 = vadd.f32 %v492_v58, %v449_v57 }
 0x30b   : > { %v630_v60 = vpop.f32.mrf.mxu0 }
 0x30c   : > { %499 = vst.msk [vmem:[#allocation6] sm:$0x1] %vm498_vm7, %v493_v59 }
 0x30d   : > { %v495_v61 = vpop.f32.mrf.mxu0 }
 0x30e   : > { %685 = shalt.err (!%p682_p2)
}
 0x30f   : > { %633 = dma.vmem_to_hbm [thread:$0]  (%p887_p9), %s510_s6, 16, %s915_s4, [#allocation7]   ;;  %v631_v62 = vpop.f32.mrf.mxu0 }
 0x310   : > { %709 = dma.done.wait (%p887_p9), [#allocation7], 16  }
 0x311   : > { %711 = vsyncadd (%p887_p9), [#allocation7], 4294967280 }
 0x312 PF: > { %s15_s17 = sadd.s32 1, %s722_s17   ;;  %s917_s15 = smov %s718_s16 }
 0x313   : > { %p12_p3 = scmp.ge.s32.totalorder %s15_s17, 5   ;;  %s918_s16 = smov %s920_s19 }
 0x315   :  { %14 = sbr.rel (!%p12_p3) target bundleno = 2 (0x2), region = 84 }
 0x31a   :  { %522 = vsyncpa [#allocation7], 1 }
 0x31b   :  { %524 = vsyncpa [#allocation7 + $0x1], 1 }

</bundles_post_ra>
